<compile_context>
chip_gen: v7x
topology: tpu7x:2x2x1
jax: 0.10.0
libtpu: 0.0.40
codegen_flags: <defaults>
</compile_context>

<pallas_src>
import jax
import jax.numpy as jnp
from jax.experimental import pallas as pl
from jax.experimental.pallas import tpu as pltpu


def _embedding_gather_kernel(ids_ref, table_hbm, out_ref, buf, sem):
    """Gather one tile of embedding rows from HBM via per-row DMAs.

    ids_ref   : (N_pad,)   int32, SMEM (scalar-prefetched token ids)
    table_hbm : (V, D)     embedding table, left in HBM (pl.ANY)
    out_ref   : (TN, D)    output tile in VMEM (auto-pipelined writeback)
    buf       : (2, TN, D) VMEM double buffer for gathered rows
    sem       : (2,)       DMA semaphores, one per buffer slot
    """
    token_tile = out_ref.shape[0]
    i = pl.program_id(0)
    num_tiles = pl.num_programs(0)
    slot = i % 2
    next_slot = 1 - slot

    def start_tile(tile_idx, s):
        base = tile_idx * token_tile

        @pl.loop(0, token_tile)
        def _(t):
            row = ids_ref[base + t]
            pltpu.make_async_copy(
                table_hbm.at[pl.ds(row, 1), :],
                buf.at[s, pl.ds(t, 1), :],
                sem.at[s],
            ).start()

    def wait_tile(s):
        # All row copies of a tile target the same per-slot semaphore and have
        # identical size, so issuing one matching wait per row drains it.
        @pl.loop(0, token_tile)
        def _(t):
            pltpu.make_async_copy(
                table_hbm.at[pl.ds(0, 1), :],
                buf.at[s, pl.ds(t, 1), :],
                sem.at[s],
            ).wait()

    # Prime the pipeline: fetch the very first tile.
    @pl.when(i == 0)
    def _():
        start_tile(i, slot)

    # Prefetch the next tile's rows into the other slot so their DMAs overlap
    # with this tile's consumption / output writeback.
    @pl.when(i + 1 < num_tiles)
    def _():
        start_tile(i + 1, next_slot)

    # Consume this tile: wait for its row DMAs, hand it to the pipelined output.
    wait_tile(slot)
    out_ref[...] = buf[slot]


def token_embedding(ids, emb_table, *, token_tile=128):
    """ids: [B, L] int, emb_table: [V, D] -> [B, L, D] (same dtype as table)."""
    B, L = ids.shape
    V, D = emb_table.shape
    N = B * L

    # Sublane-align the tile; pad the token count up to a whole number of tiles.
    token_tile = max(8, (int(token_tile) + 7) // 8 * 8)
    num_tiles = pl.cdiv(N, token_tile)
    n_pad = num_tiles * token_tile

    ids_flat = ids.reshape(N).astype(jnp.int32)
    # Clamp so out-of-range (or padded) ids never launch an out-of-bounds DMA.
    ids_flat = jnp.clip(ids_flat, 0, V - 1)
    if n_pad != N:
        ids_flat = jnp.pad(ids_flat, (0, n_pad - N))

    itemsize = jnp.dtype(emb_table.dtype).itemsize
    # VMEM footprint: (2, TN, D) gather scratch + double-buffered (TN, D) output.
    vmem_need = 4 * token_tile * D * itemsize + (2 << 20)
    vmem_limit = int(min(48 * 1024 * 1024, max(16 * 1024 * 1024, vmem_need)))

    out_flat = pl.pallas_call(
        _embedding_gather_kernel,
        out_shape=jax.ShapeDtypeStruct((n_pad, D), emb_table.dtype),
        grid_spec=pltpu.PrefetchScalarGridSpec(
            num_scalar_prefetch=1,                      # ids -> SMEM
            grid=(num_tiles,),
            in_specs=[
                pl.BlockSpec(memory_space=pl.ANY),      # table stays in HBM
            ],
            out_specs=pl.BlockSpec((token_tile, D), lambda i, ids: (i, 0)),
            scratch_shapes=[
                pltpu.VMEM((2, token_tile, D), emb_table.dtype),
                pltpu.SemaphoreType.DMA((2,)),
            ],
        ),
        compiler_params=pltpu.CompilerParams(
            # Cross-iteration prefetch carries state between grid steps, so the
            # token axis must be sequential ("arbitrary"), not megacore-split.
            dimension_semantics=("arbitrary",),
            vmem_limit_bytes=vmem_limit,
        ),
    )(ids_flat, emb_table)

    return out_flat[:N].reshape(B, L, D)


if __name__ == "__main__":
    # Small shapes consistent with TokenEmbedding(vocab_size, dim).
    vocab_size, dim = 64, 128
    batch, length = 2, 8

    key = jax.random.PRNGKey(0)
    k_emb, k_ids = jax.random.split(key)

    # nn.Embedding default init: weight ~ N(0, 1).
    emb_table = jax.random.normal(k_emb, (vocab_size, dim), dtype=jnp.float32)
    ids = jax.random.randint(k_ids, (batch, length), 0, vocab_size, dtype=jnp.int32)

    ref = emb_table[ids]

    # Multi-tile path (exercises the double-buffered prefetch across grid steps).
    out = token_embedding(ids, emb_table, token_tile=8)
    out = jax.block_until_ready(out)
    assert out.shape == (batch, length, dim)
    assert jnp.allclose(out, ref, atol=1e-6, rtol=1e-6)

    # Default (large-tile, padded) path.
    out2 = jax.block_until_ready(token_embedding(ids, emb_table))
    assert jnp.allclose(out2, ref, atol=1e-6, rtol=1e-6)

    print("KERNEL_OK")
</pallas_src>

<mosaic_0001>
module attributes {stable_mosaic.version = 11 : i64} {
  func.func @_embedding_gather_kernel(%arg0: i32, %arg1: memref<16xi32, #tpu.memory_space<smem>>, %arg2: memref<64x128xf32, #tpu.memory_space<any>>, %arg3: memref<8x128xf32, #tpu.memory_space<vmem>>, %arg4: memref<2x8x128xf32, #tpu.memory_space<vmem>>, %arg5: memref<2x!tpu.dma_semaphore, #tpu.memory_space<semaphore_mem>>) attributes {dimension_semantics = [#tpu.dimension_semantics<arbitrary>], iteration_bounds = array<i64: 2>, scalar_prefetch = 1 : i64, scratch_operands = 2 : i64, tpu.core_type = #tpu.core_type<tc>, window_params = [{}, {transform_indices = @transform_1, window_bounds = array<i64: 8, 128>}]} {
    %c2_i32 = arith.constant 2 : i32
    %c0_i32 = arith.constant 0 : i32
    %0 = arith.cmpi eq, %c2_i32, %c0_i32 : i32
    %c1_i32 = arith.constant 1 : i32
    %1 = arith.select %0, %c1_i32, %c2_i32 : i32
    %2 = arith.remsi %arg0, %1 : i32
    %c0_i32_0 = arith.constant 0 : i32
    %3 = arith.cmpi ne, %2, %c0_i32_0 : i32
    %c0_i32_1 = arith.constant 0 : i32
    %4 = arith.cmpi slt, %2, %c0_i32_1 : i32
    %c0_i32_2 = arith.constant 0 : i32
    %5 = arith.cmpi slt, %1, %c0_i32_2 : i32
    %6 = arith.xori %4, %5 : i1
    %7 = arith.andi %6, %3 : i1
    %8 = arith.addi %2, %1 : i32
    %9 = arith.select %7, %8, %2 : i32
    %c1_i32_3 = arith.constant 1 : i32
    %10 = arith.subi %c1_i32_3, %9 : i32
    %c0_i32_4 = arith.constant 0 : i32
    %11 = arith.cmpi eq, %arg0, %c0_i32_4 : i32
    %12 = arith.extui %11 : i1 to i32
    %c0_i32_5 = arith.constant 0 : i32
    %13 = arith.cmpi ne, %12, %c0_i32_5 : i32
    scf.if %13 {
      %c8_i32_15 = arith.constant 8 : i32
      %23 = arith.muli %arg0, %c8_i32_15 : i32
      %c0_i32_16 = arith.constant 0 : i32
      %c8_i32_17 = arith.constant 8 : i32
      %24 = arith.addi %c0_i32_16, %c8_i32_17 : i32
      %c1_i32_18 = arith.constant 1 : i32
      scf.for %arg6 = %c0_i32_16 to %24 step %c1_i32_18  : i32 {
        %c1_i32_20 = arith.constant 1 : i32
        %25 = arith.muli %arg6, %c1_i32_20 : i32
        %c0_i32_21 = arith.constant 0 : i32
        %26 = arith.addi %c0_i32_21, %25 : i32
        %27 = arith.addi %23, %26 : i32
        %28 = arith.index_cast %27 : i32 to index
        %29 = memref.load %arg1[%28] : memref<16xi32, #tpu.memory_space<smem>>
        %c0_i32_22 = arith.constant 0 : i32
        %30 = tpu.memref_slice %arg2[%29, %c0_i32_22] : memref<64x128xf32, #tpu.memory_space<any>> -> memref<1x128xf32, #tpu.memory_space<any>>
        %c0_i32_23 = arith.constant 0 : i32
        %31 = tpu.memref_slice %arg4[%9, %26, %c0_i32_23] : memref<2x8x128xf32, #tpu.memory_space<vmem>> -> memref<1x1x128xf32, #tpu.memory_space<vmem>>
        %32 = tpu.memref_squeeze %31 : memref<1x1x128xf32, #tpu.memory_space<vmem>> -> memref<1x128xf32, #tpu.memory_space<vmem>>
        %33 = tpu.memref_slice %arg5[%9] : memref<2x!tpu.dma_semaphore, #tpu.memory_space<semaphore_mem>> -> memref<1x!tpu.dma_semaphore, #tpu.memory_space<semaphore_mem>>
        %34 = tpu.memref_squeeze %33 : memref<1x!tpu.dma_semaphore, #tpu.memory_space<semaphore_mem>> -> memref<!tpu.dma_semaphore, #tpu.memory_space<semaphore_mem>>
        tpu.enqueue_dma source(%30 : memref<1x128xf32, #tpu.memory_space<any>>) target(%32 : memref<1x128xf32, #tpu.memory_space<vmem>>) target_semaphore(%34 : memref<!tpu.dma_semaphore, #tpu.memory_space<semaphore_mem>>)
      }
      %c8_i32_19 = arith.constant 8 : i32
    } else {
    }
    %c1_i32_6 = arith.constant 1 : i32
    %14 = arith.addi %arg0, %c1_i32_6 : i32
    %c2_i32_7 = arith.constant 2 : i32
    %15 = arith.cmpi slt, %14, %c2_i32_7 : i32
    %16 = arith.extui %15 : i1 to i32
    %c0_i32_8 = arith.constant 0 : i32
    %17 = arith.cmpi ne, %16, %c0_i32_8 : i32
    scf.if %17 {
      %c1_i32_15 = arith.constant 1 : i32
      %23 = arith.addi %arg0, %c1_i32_15 : i32
      %c8_i32_16 = arith.constant 8 : i32
      %24 = arith.muli %23, %c8_i32_16 : i32
      %c0_i32_17 = arith.constant 0 : i32
      %c8_i32_18 = arith.constant 8 : i32
      %25 = arith.addi %c0_i32_17, %c8_i32_18 : i32
      %c1_i32_19 = arith.constant 1 : i32
      scf.for %arg6 = %c0_i32_17 to %25 step %c1_i32_19  : i32 {
        %c1_i32_21 = arith.constant 1 : i32
        %26 = arith.muli %arg6, %c1_i32_21 : i32
        %c0_i32_22 = arith.constant 0 : i32
        %27 = arith.addi %c0_i32_22, %26 : i32
        %28 = arith.addi %24, %27 : i32
        %29 = arith.index_cast %28 : i32 to index
        %30 = memref.load %arg1[%29] : memref<16xi32, #tpu.memory_space<smem>>
        %c0_i32_23 = arith.constant 0 : i32
        %31 = tpu.memref_slice %arg2[%30, %c0_i32_23] : memref<64x128xf32, #tpu.memory_space<any>> -> memref<1x128xf32, #tpu.memory_space<any>>
        %c0_i32_24 = arith.constant 0 : i32
        %32 = tpu.memref_slice %arg4[%10, %27, %c0_i32_24] : memref<2x8x128xf32, #tpu.memory_space<vmem>> -> memref<1x1x128xf32, #tpu.memory_space<vmem>>
        %33 = tpu.memref_squeeze %32 : memref<1x1x128xf32, #tpu.memory_space<vmem>> -> memref<1x128xf32, #tpu.memory_space<vmem>>
        %34 = tpu.memref_slice %arg5[%10] : memref<2x!tpu.dma_semaphore, #tpu.memory_space<semaphore_mem>> -> memref<1x!tpu.dma_semaphore, #tpu.memory_space<semaphore_mem>>
        %35 = tpu.memref_squeeze %34 : memref<1x!tpu.dma_semaphore, #tpu.memory_space<semaphore_mem>> -> memref<!tpu.dma_semaphore, #tpu.memory_space<semaphore_mem>>
        tpu.enqueue_dma source(%31 : memref<1x128xf32, #tpu.memory_space<any>>) target(%33 : memref<1x128xf32, #tpu.memory_space<vmem>>) target_semaphore(%35 : memref<!tpu.dma_semaphore, #tpu.memory_space<semaphore_mem>>)
      }
      %c8_i32_20 = arith.constant 8 : i32
    } else {
    }
    %c0_i32_9 = arith.constant 0 : i32
    %c8_i32 = arith.constant 8 : i32
    %18 = arith.addi %c0_i32_9, %c8_i32 : i32
    %c1_i32_10 = arith.constant 1 : i32
    scf.for %arg6 = %c0_i32_9 to %18 step %c1_i32_10  : i32 {
      %c1_i32_15 = arith.constant 1 : i32
      %23 = arith.muli %arg6, %c1_i32_15 : i32
      %c0_i32_16 = arith.constant 0 : i32
      %24 = arith.addi %c0_i32_16, %23 : i32
      %c0_i32_17 = arith.constant 0 : i32
      %c0_i32_18 = arith.constant 0 : i32
      %25 = tpu.memref_slice %arg2[%c0_i32_17, %c0_i32_18] : memref<64x128xf32, #tpu.memory_space<any>> -> memref<1x128xf32, #tpu.memory_space<any>>
      %c0_i32_19 = arith.constant 0 : i32
      %26 = tpu.memref_slice %arg4[%9, %24, %c0_i32_19] : memref<2x8x128xf32, #tpu.memory_space<vmem>> -> memref<1x1x128xf32, #tpu.memory_space<vmem>>
      %27 = tpu.memref_squeeze %26 : memref<1x1x128xf32, #tpu.memory_space<vmem>> -> memref<1x128xf32, #tpu.memory_space<vmem>>
      %28 = tpu.memref_slice %arg5[%9] : memref<2x!tpu.dma_semaphore, #tpu.memory_space<semaphore_mem>> -> memref<1x!tpu.dma_semaphore, #tpu.memory_space<semaphore_mem>>
      %29 = tpu.memref_squeeze %28 : memref<1x!tpu.dma_semaphore, #tpu.memory_space<semaphore_mem>> -> memref<!tpu.dma_semaphore, #tpu.memory_space<semaphore_mem>>
      tpu.wait_dma2 semaphore(%29 : memref<!tpu.dma_semaphore, #tpu.memory_space<semaphore_mem>>) src(%25 : memref<1x128xf32, #tpu.memory_space<any>>) dst(%27 : memref<1x128xf32, #tpu.memory_space<vmem>>)
    }
    %c8_i32_11 = arith.constant 8 : i32
    %19 = arith.index_cast %9 : i32 to index
    %c0 = arith.constant 0 : index
    %c0_12 = arith.constant 0 : index
    %20 = vector.load %arg4[%19, %c0, %c0_12] : memref<2x8x128xf32, #tpu.memory_space<vmem>>, vector<1x8x128xf32>
    %21 = vector.shape_cast %20 : vector<1x8x128xf32> to vector<8x128xf32>
    %c0_13 = arith.constant 0 : index
    %c0_14 = arith.constant 0 : index
    %22 = vector.load %arg3[%c0_13, %c0_14] : memref<8x128xf32, #tpu.memory_space<vmem>>, vector<8x128xf32>
    tpu.vector_store %arg3[%c0_13, %c0_14], %21 {strides = array<i32>} : memref<8x128xf32, #tpu.memory_space<vmem>>, vector<8x128xf32>,
    return
  }
  func.func @transform_1(%arg0: i32, %arg1: memref<16xi32, #tpu.memory_space<smem>>) -> (i32, i32) {
    %c0_i32 = arith.constant 0 : i32
    %c0_i32_0 = arith.constant 0 : i32
    return %arg0, %c0_i32 : i32, i32
  }
}

</mosaic_0001>

<bundles_post_ra>
// kernel: tpu_custom_call.1
= control target key start
LH: loop header
LB: loop body
LE: loop exit
PB: predicated region body
PF: predicated region fallthrough
CT: control target
= control target key end

     0   :  { %s640_s0 = inlined_call_operand.hbm [shape: s32[16], index: 0, kind: input, shape index: {}]   ;;  %s641_s1 = inlined_call_operand.hbm [shape: f32[64,128], index: 1, kind: input, shape index: {}]   ;;  %s642_s2 = inlined_call_operand.hbm [shape: f32[16,128], index: 2, kind: output, shape index: {}]  }
   0x1   :  { %s320_s11 = scalar_lea.hbm %s640_s0, 16 }
   0x2   :  { %p321_p0 = scmp.ne.s32.totalorder %s640_s0, %s320_s11  ;;  %p324_p1 = scmp.lt.u32.totalorder %s320_s11, %s640_s0 }
   0x4   :  { %p326_p2 = pnand %p324_p1, %p321_p0 }
   0x6   :  { %329 = shalt.err (!%p326_p2)  }
   0x7   :  { %s462_s16 = smov [#allocation5]  }
   0x8   :  { %8 = dma.hbm_to_smem %s640_s0, 16, %s462_s16, [#allocation4] }
   0x9   :  { %430 = dma.done.wait [#allocation4], 16 }
   0xa   :  { %431 = vsyncadd [#allocation4], 4294967280 }
   0xb   :  { %10 = sfence }
   0xc   :  { %11 = vsyncpa [#allocation7], 0 }
   0xd   :  { %13 = vsyncpa [#allocation7 + $0x1], 0  ;;  %s493_s19 = smov 0   ;;  %s495_s20 = smov 0  }
   0xe   :  { %s497_s21 = smov 0  }
   0xf LB: > { %s240_s0 = sadd.s32 4294967295, %s448_s21   ;;  %s510_s22 = sadd.s32 1, %s448_s21   ;;  %s448_s21 = sphi %s497_s21, %s652_s21   ;;  %s444_s20 = sphi %s495_s20, %s651_s20   ;;  %s440_s19 = sphi %s493_s19, %s650_s19  }
  0x10   : > { %s22_s23 = ssub.s32 %s448_s21, %s510_s22  ;;  %s25_s24 = sadd.s32 1, %s444_s20 }
  0x11   : > { %p23_p3 = scmp.eq.s32.totalorder %s22_s23, 0  ;;  %p241_p4 = scmp.ne.s32.totalorder %s22_s23, 0 }
  0x12   : > { %p29_p5 = scmp.eq.s32.totalorder %s448_s21, 1  ;;  %p34_p6 = scmp.ne.s32.totalorder %s444_s20, %s440_s19 }
  0x13   : > { %s519_s25 = scalar_select %p23_p3, %s444_s20, %s25_s24  }
  0x14   : > { %p521_p7 = por %p241_p4, %p29_p5  ;;  %p35_p8 = scmp.eq.s32.totalorder %s240_s0, 1 }
  0x15   : > { %p242_p10 = scmp.ge.s32.totalorder %s448_s21, 2 }
  0x16   : > { %p525_p9 = por %p35_p8, %p34_p6  ;;  %s643_s28 = sand.u32 (!%p242_p10), 1, %s444_s20  }
  0x17   : > { %44 = sbr.rel (%p242_p10) target bundleno = 159 (0x9f), region = 12  ;;  %p52_p11 = scmp.lt.s32.totalorder (!%p242_p10), %s448_s21, 0 }
  0x18   : > { %s645_s27 = scalar_select %p525_p9, 1, 0 }
  0x19   : > { %s534_s29 = sshll.u32 (!%p242_p10), %s643_s28, 3  ;;  %s53_s30 = ssub.s32 (!%p242_p10), 0, %s448_s21 }
  0x1a   : > { %s244_s3 = smin.u32 (!%p242_p10), %s448_s21, %s53_s30  ;;  %p247_p13 = scmp.ne.s32.totalorder (!%p242_p10), %s448_s21, 0 }
  0x1b   : > { %s55_s4 = sand.u32 (!%p242_p10), 1, %s244_s3  }
  0x1c   : > { %s56_s5 = ssub.s32 (!%p242_p10), 0, %s55_s4 }
  0x1e   : > { %s654_s5 = smov (!%p52_p11, %s56_s5), %s55_s4  ;;  %68 = sbr.rel (%p247_p13) target bundleno = 77 (0x4d), region = 16 }
  0x1f   : > { %p246_p12 = scmp.lt.s32.totalorder %s654_s5, 0  ;;  %s62_s6 = sadd.s32 2, %s654_s5 }
  0x20   : > { %s248_s9 = sshll.u32 (!%p247_p13), %s448_s21, 3  ;;  %s544_s10 = smov (!%p247_p13), 0  }
  0x21   : > { %s656_s6 = smov (!%p246_p12, %s62_s6), %s654_s5 }
  0x22   : > { %s64_s7 = ssub.s32 1, %s656_s6 }
  0x25 LB: >> { %s250_s11 = sshll.u32 %s656_s6, 3  ;;  %s76_s12 = sadd.s32 %s452_s10, %s248_s9  ;;  %s452_s10 = sphi %s544_s10, %s75_s10  }
  0x26   : >> { %s81_s13 = sadd.s32 %s452_s10, %s250_s11  ;;  %s77_s14 = sld [smem:[#allocation5 + %s76_s12]] }
  0x27   : >> { %s82_s15 = scalar_lea.vmem [#allocation2], %s81_s13  ;;  %s83_s24 = scalar_lea.sflag [#allocation3], %s656_s6 }
  0x28   : >> { %s91_s16 = sshll.u32 %s82_s15, 4  ;;  %s332_s5 = scalar_lea.hbm %s641_s1, 1024  ;;  %s92_s16 = int_to_ptr.vmem [resolvable:$true] %s91_s16 }
  0x2c   : >> { %s249_s17 = sshll.u32 %s77_s14, 4 }
  0x2d   : >> { %s79_s23 = scalar_lea.hbm %s641_s1, %s249_s17 }
  0x2e   : >> { %s330_s30 = scalar_lea.hbm %s79_s23, 16  ;;  %p333_p1 = scmp.lt.u32.totalorder %s79_s23, %s641_s1 }
  0x2f   : >> { %p331_p0 = scmp.ne.s32.totalorder %s79_s23, %s330_s30  ;;  %p334_p2 = scmp.lt.u32.totalorder %s332_s5, %s330_s30 }
  0x30   : >> { %p336_p4 = scmp.lt.u32.totalorder %s330_s30, %s79_s23 }
  0x31   : >> { %p335_p3 = por %p334_p2, %p333_p1 }
  0x33   : >> { %p337_p5 = por %p336_p4, %p335_p3 }
  0x35   : >> { %p338_p6 = pnand %p337_p5, %p331_p0 }
  0x37   : >> { %341 = shalt.err (!%p338_p6)  }
  0x38   : >> { %s342_s11 = scalar_lea.vmem %s92_s16, 16  ;;  %s463_s12 = smov [#allocation2]  }
  0x39   : >> { %p343_p8 = scmp.ne.s32.totalorder %s92_s16, %s342_s11  ;;  %s344_s13 = sshll.u32 %s463_s12, 4  ;;  %s345_s13 = int_to_ptr.vmem [resolvable:$false] %s344_s13 }
  0x3a   : >> { %s346_s14 = scalar_lea.vmem %s345_s13, 256  ;;  %p347_p10 = scmp.lt.s32.totalorder %s92_s16, %s345_s13 }
  0x3b   : >> { %p348_p11 = scmp.lt.s32.totalorder %s346_s14, %s342_s11 }
  0x3d   : >> { %p349_p12 = por %p348_p11, %p347_p10 }
  0x3f   : >> { %p350_p13 = pnand %p349_p12, %p343_p8 }
  0x41   : >> { %353 = shalt.err (!%p350_p13)  }
  0x42   : >> { %94 = dma.hbm_to_vmem [thread:$0]  %s79_s23, 16, %s92_s16, %s83_s24 }
  0x43   : >> { %s75_s10 = sadd.s32 1, %s452_s10  }
  0x44   : >> { %p72_p9 = scmp.ge.s32.totalorder %s75_s10, 8  }
  0x46   : > { %74 = sbr.rel (!%p72_p9) target bundleno = 37 (0x25), region = 90 }
  0x4d PF: > { %p251_p0 = scmp.ge.s32.totalorder %s510_s22, 2 }
  0x4e   : > { %s262_s28 = sshll.u32 (!%p251_p0), %s448_s21, 3  ;;  %s571_s15 = smov (!%p251_p0), 0  }
  0x4f   : > { %99 = sbr.rel (%p251_p0) target bundleno = 126 (0x7e), region = 31  ;;  %s569_s8 = sadd.s32 (!%p251_p0), 8, %s262_s28 }
  0x56 LB: >> { %s254_s9 = sshll.u32 %s64_s7, 3  ;;  %s107_s10 = sadd.s32 %s456_s15, %s569_s8  ;;  %s456_s15 = sphi %s571_s15, %s106_s15  }
  0x57   : >> { %s112_s16 = sadd.s32 %s456_s15, %s254_s9  ;;  %s108_s17 = sld [smem:[#allocation5 + %s107_s10]] }
  0x58   : >> { %s113_s18 = scalar_lea.vmem [#allocation2], %s112_s16  ;;  %s114_s4 = scalar_lea.sflag [#allocation3], %s64_s7 }
  0x59   : >> { %s122_s0 = sshll.u32 %s113_s18, 4  ;;  %s356_s13 = scalar_lea.hbm %s641_s1, 1024  ;;  %s123_s0 = int_to_ptr.vmem [resolvable:$true] %s122_s0 }
  0x5d   : >> { %s253_s23 = sshll.u32 %s108_s17, 4 }
  0x5e   : >> { %s110_s3 = scalar_lea.hbm %s641_s1, %s253_s23 }
  0x5f   : >> { %s354_s5 = scalar_lea.hbm %s110_s3, 16  ;;  %p357_p1 = scmp.lt.u32.totalorder %s110_s3, %s641_s1 }
  0x60   : >> { %p355_p9 = scmp.ne.s32.totalorder %s110_s3, %s354_s5  ;;  %p358_p2 = scmp.lt.u32.totalorder %s356_s13, %s354_s5 }
  0x61   : >> { %p360_p4 = scmp.lt.u32.totalorder %s354_s5, %s110_s3 }
  0x62   : >> { %p359_p3 = por %p358_p2, %p357_p1 }
  0x64   : >> { %p361_p5 = por %p360_p4, %p359_p3 }
  0x66   : >> { %p362_p6 = pnand %p361_p5, %p355_p9 }
  0x68   : >> { %365 = shalt.err (!%p362_p6)  }
  0x69   : >> { %s366_s9 = scalar_lea.vmem %s123_s0, 16  ;;  %s464_s10 = smov [#allocation2]  }
  0x6a   : >> { %p367_p8 = scmp.ne.s32.totalorder %s123_s0, %s366_s9  ;;  %s368_s16 = sshll.u32 %s464_s10, 4  ;;  %s369_s16 = int_to_ptr.vmem [resolvable:$false] %s368_s16 }
  0x6b   : >> { %s370_s17 = scalar_lea.vmem %s369_s16, 256  ;;  %p371_p10 = scmp.lt.s32.totalorder %s123_s0, %s369_s16 }
  0x6c   : >> { %p372_p11 = scmp.lt.s32.totalorder %s370_s17, %s366_s9 }
  0x6e   : >> { %p373_p12 = por %p372_p11, %p371_p10 }
  0x70   : >> { %p374_p13 = pnand %p373_p12, %p367_p8 }
  0x72   : >> { %377 = shalt.err (!%p374_p13)  }
  0x73   : >> { %125 = dma.hbm_to_vmem [thread:$0]  %s110_s3, 16, %s123_s0, %s114_s4 }
  0x74   : >> { %s106_s15 = sadd.s32 1, %s456_s15  }
  0x75   : >> { %p103_p0 = scmp.ge.s32.totalorder %s106_s15, 8  }
  0x77   : > { %105 = sbr.rel (!%p103_p0) target bundleno = 86 (0x56), region = 101 }
  0x7e PF: > { %s458_s18 = smov 0  }
  0x7f LB: >> { %s132_s23 = scalar_lea.sflag [#allocation3], %s656_s6  ;;  %s460_s18 = sphi %s458_s18, %s131_s18  }
  0x80   : >> { %432 = dma.done.wait %s132_s23, 16 }
  0x81   : >> { %433 = vsyncadd %s132_s23, 4294967280  ;;  %s131_s18 = sadd.s32 1, %s460_s18  }
  0x82   : >> { %p128_p9 = scmp.ge.s32.totalorder %s131_s18, 8  }
  0x83   : > { %s255_s15 = sshll.u32 (%p128_p9), %s656_s6, 3  ;;  %s257_s7 = sshll.u32 (%p128_p9), %s448_s21, 7 }
  0x84   : > { %130 = sbr.rel (!%p128_p9) target bundleno = 127 (0x7f), region = 112  ;;  %s137_s8 = scalar_lea.vmem (%p128_p9), [#allocation2], %s255_s15 }
  0x85   : > { %v138_v0 = vld [vmem:[%s137_s8] sm:$0xff] (%p128_p9)  ;;  %s601_s30 = scalar_lea.hbm (%p128_p9), %s642_s2, %s257_s7  ;;  %s646_s3 = scalar_lea.vmem (%p128_p9), [#allocation6], %s534_s29 }
  0x86   : > { %s154_s4 = sshll.u32 (%p128_p9), %s646_s3, 4  ;;  %s647_s5 = smov (%p128_p9), %s646_s3  ;;  %s155_s4 = int_to_ptr.vmem [resolvable:$true] %s154_s4 }
  0x87   : > { %139 = vst [vmem:[%s647_s5] sm:$0xff] (%p128_p9), %v138_v0  ;;  %s648_s11 = sand.u32 (%p128_p9), 1, %s444_s20   ;;  %s378_s13 = scalar_lea.vmem (%p128_p9), %s155_s4, 128 }
  0x88   : > { %s141_s12 = scalar_lea.sflag (%p128_p9), [#allocation7], %s648_s11  ;;  %p379_p1 = scmp.ne.s32.totalorder (%p128_p9), %s155_s4, %s378_s13 }
  0x89   : > { %s465_s6 = smov (%p128_p9), [#allocation6]  }
  0x8a   : > { %p380_p2 = pnand (%p128_p9), %p379_p1, %p521_p7  ;;  %s382_s14 = sshll.u32 (%p128_p9), %s465_s6, 4  ;;  %s383_s14 = int_to_ptr.vmem [resolvable:$false] %s382_s14 }
  0x8b   : > { %s384_s28 = scalar_lea.vmem %s383_s14, 256  ;;  %p385_p4 = scmp.lt.s32.totalorder %s155_s4, %s383_s14 }
  0x8c   : > { %p381_p3 = pneg %p380_p2  ;;  %p386_p5 = scmp.lt.s32.totalorder %s384_s28, %s378_s13 }
  0x8e   : > { %p387_p6 = por %p386_p5, %p385_p4 }
  0x90   : > { %p388_p8 = pnand %p387_p6, %p381_p3 }
  0x92   : > { %391 = shalt.err (!%p388_p8)
}
  0x93   : > { %s392_s29 = scalar_lea.hbm %s601_s30, 128  ;;  %s396_s16 = scalar_lea.hbm %s642_s2, 256 }
  0x94   : > { %p393_p10 = scmp.ne.s32.totalorder %s601_s30, %s392_s29  ;;  %p397_p13 = scmp.lt.u32.totalorder %s601_s30, %s642_s2 }
  0x95   : > { %p398_p0 = scmp.lt.u32.totalorder %s396_s16, %s392_s29  ;;  %p400_p1 = scmp.lt.u32.totalorder %s392_s29, %s601_s30 }
  0x96   : > { %p394_p11 = pnand %p393_p10, %p521_p7 }
  0x97   : > { %p399_p9 = por %p398_p0, %p397_p13 }
  0x98   : > { %p395_p12 = pneg %p394_p11 }
  0x99   : > { %p401_p2 = por %p400_p1, %p399_p9 }
  0x9b   : > { %p402_p3 = pnand %p401_p2, %p395_p12 }
  0x9d   : > { %405 = shalt.err (!%p402_p3)
}
  0x9e   : > { %264 = dma.vmem_to_hbm [thread:$0]  (%p521_p7), %s155_s4, 128, %s601_s30, %s141_s12  }
  0x9f PF: > { %p270_p4 = scmp.ge.s32.totalorder %s448_s21, 1  ;;  %s166_s23 = sand.u32 1, %s440_s19  }
  0xa0   : > { %p649_p5 = scmp.ne.s32.totalorder %s645_s27, 0  ;;  %s167_s15 = scalar_lea.sflag [#allocation7], %s166_s23 }
  0xa2   : > { %p267_p6 = pnand %p270_p4, %p649_p5 }
  0xa4   : > { %435 = dma.done.wait (!%p267_p6), %s167_s15, 128  }
  0xa5   : > { %437 = vsyncadd (!%p267_p6), %s167_s15, 4294967168  ;;  %p16_p8 = scmp.ge.s32.totalorder %s510_s22, 3   ;;  %s650_s19 = smov %s444_s20 }
  0xa6   : > { %s651_s20 = smov %s519_s25  ;;  %s652_s21 = smov %s510_s22 }
  0xa7   :  { %18 = sbr.rel (!%p16_p8) target bundleno = 15 (0xf), region = 123 }
  0xae   :  { %172 = vsyncpa [#allocation7], 1 }
  0xaf   :  { %174 = vsyncpa [#allocation7 + $0x1], 1 }
  0xb0   :  { %175 = vsyncmov [#allocation3] }
  0xb3   :  { %s176_s21 = vpop.sfrf %175 }
  0xb4   :  { %p260_p7 = scmp.ne.s32.totalorder %s176_s21, 0 }
  0xb6   :  { %180 = shalt.err (%p260_p7)  }
  0xb7   :  { %182 = vsyncmov [#allocation3 + $0x1] }
  0xba   :  { %s183_s26 = vpop.sfrf %182 }
  0xbb   :  { %p261_p10 = scmp.ne.s32.totalorder %s183_s26, 0 }
  0xbd   :  { %187 = shalt.err (%p261_p10)  }

</bundles_post_ra>
